<compile_context>
chip_gen: v5e
topology: v5e:2x2
jax: 0.10.0
libtpu: 0.0.40
codegen_flags: <defaults>
</compile_context>

<pallas_src>
import functools

import jax
import jax.numpy as jnp
from jax.experimental import pallas as pl
from jax.experimental.pallas import tpu as pltpu

LAMBDA_Y2 = 0.1                               # deterministic __init__(lambda_y2)
_TARGET_BLOCK_BYTES = 8 * 1024 * 1024         # ~8 MiB DMA block per input
_CHUNK_BYTES = 512 * 1024                     # ~512 KiB in-kernel compute chunk
_VMEM_LIMIT_BYTES = 48 * 1024 * 1024          # 2 in x 2 buf x 8 MiB + headroom


def _num_tensorcores():
    # 2-way grid sharding only helps on multi-TensorCore chips (v7x).
    try:
        kind = jax.devices()[0].device_kind.lower()
    except Exception:
        return 1
    return 2 if ("v7" in kind or "7x" in kind) else 1


def _y2_loss_kernel(yp_ref, yt_ref, out_ref, sse_acc, reg_acc, *,
                    true_b, tb, chunk, blocks_per_shard, fold_reg):
    s = pl.program_id(0)          # shard axis ("parallel")
    b = pl.program_id(1)          # block-within-shard axis ("arbitrary")

    @pl.when(b == 0)
    def _init():
        sse_acc[...] = jnp.zeros_like(sse_acc)
        reg_acc[...] = jnp.zeros_like(reg_acc)

    # Unclamped global row offset of this block; drives the tail mask so that
    # blocks clamped by the index_map (fully out-of-range) contribute nothing,
    # and garbage in partially out-of-range blocks is zeroed before summing.
    block_start = (s * blocks_per_shard + b) * tb
    n_chunks = tb // chunk

    @pl.loop(0, n_chunks)
    def _(ci):
        r0 = pl.multiple_of(ci * chunk, chunk)
        row_ids = (jax.lax.broadcasted_iota(jnp.int32, (chunk, 1), 0)
                   + block_start + r0)
        valid2d = row_ids < true_b            # (chunk, 1)
        valid3d = valid2d[:, :, None]         # (chunk, 1, 1)

        yp = yp_ref[pl.ds(r0, chunk), :, :].astype(jnp.float32)
        yt = yt_ref[pl.ds(r0, chunk), :, :].astype(jnp.float32)
        diff = jnp.where(valid3d, yp - yt, 0.0)
        sse_acc[...] += jnp.sum(diff * diff, axis=0)      # (R, C) VPU adds

        # |y_pred[:, 0, :]| read straight from the ref (no slice of the big
        # materialised block).
        row0 = yp_ref[pl.ds(r0, chunk), 0:1, :]
        row0 = row0.reshape(chunk, -1).astype(jnp.float32)
        row0_abs = jnp.where(valid2d, jnp.abs(row0), 0.0)
        if fold_reg:   # keep the accumulator a single (8, C) tile
            reg_acc[...] += row0_abs.reshape(chunk // 8, 8, -1).sum(axis=0)
        else:
            reg_acc[...] += row0_abs

    @pl.when(b == pl.num_programs(1) - 1)
    def _finalize():
        # Single cross-lane/sublane reduce per shard, written to SMEM.
        out_ref[0, 0] = jnp.sum(sse_acc[...])
        out_ref[0, 1] = jnp.sum(reg_acc[...])


def y2_loss_regularisation(y_pred, y_true, lambda_y2=LAMBDA_Y2,
                           block_batch=None, num_shards=None):
    assert y_pred.shape == y_true.shape and y_pred.ndim == 3
    B, R, C = y_pred.shape
    itemsize = jnp.dtype(y_pred.dtype).itemsize
    row_bytes = R * C * itemsize

    # --- tiling: ~8 MiB DMA blocks, processed in ~512 KiB compute chunks ----
    chunk = max(8, (_CHUNK_BYTES // row_bytes) // 8 * 8)
    if block_batch is None:
        tb = max(1, _TARGET_BLOCK_BYTES // row_bytes)
    else:
        tb = int(block_batch)
    tb = min(tb, B)
    if tb >= chunk:
        tb = (tb // chunk) * chunk            # tb is a multiple of chunk
    else:
        chunk = tb                            # single chunk per block
    fold_reg = (chunk % 8 == 0) and chunk >= 8

    num_valid_blocks = pl.cdiv(B, tb)
    if num_shards is None:
        num_shards = _num_tensorcores()
    num_shards = max(1, min(int(num_shards), num_valid_blocks))
    blocks_per_shard = pl.cdiv(num_valid_blocks, num_shards)
    max_block = num_valid_blocks - 1

    def in_map(s, b):
        # Clamp so the DMA never starts past the end of the array; the mask in
        # the kernel (built from the unclamped index) zeroes duplicated rows.
        return (jnp.minimum(s * blocks_per_shard + b, max_block), 0, 0)

    kernel = functools.partial(
        _y2_loss_kernel, true_b=B, tb=tb, chunk=chunk,
        blocks_per_shard=blocks_per_shard, fold_reg=fold_reg)

    reg_rows = 8 if fold_reg else chunk

    partials = pl.pallas_call(
        kernel,
        out_shape=jax.ShapeDtypeStruct((num_shards, 2), jnp.float32),
        grid_spec=pltpu.PrefetchScalarGridSpec(
            num_scalar_prefetch=0,
            grid=(num_shards, blocks_per_shard),
            in_specs=[
                pl.BlockSpec((tb, R, C), in_map),
                pl.BlockSpec((tb, R, C), in_map),
            ],
            out_specs=pl.BlockSpec(
                (1, 2), lambda s, b: (s, 0), memory_space=pltpu.SMEM),
            scratch_shapes=[
                pltpu.VMEM((R, C), jnp.float32),         # SSE partials
                pltpu.VMEM((reg_rows, C), jnp.float32),  # |row 0| partials
            ],
        ),
        compiler_params=pltpu.CompilerParams(
            dimension_semantics=("parallel", "arbitrary"),
            vmem_limit_bytes=_VMEM_LIMIT_BYTES,
        ),
        cost_estimate=pl.CostEstimate(
            flops=3 * B * R * C,
            transcendentals=0,
            bytes_accessed=2 * B * R * C * itemsize,
        ),
    )(y_pred, y_true)

    sse = jnp.sum(partials[:, 0])
    reg = jnp.sum(partials[:, 1])
    mse = sse / jnp.float32(B * R * C)        # true (unpadded) element counts
    return mse + jnp.float32(lambda_y2) * (reg / jnp.float32(B * C))


def _reference(y_pred, y_true, lambda_y2=LAMBDA_Y2):
    yp = y_pred.astype(jnp.float32)
    yt = y_true.astype(jnp.float32)
    mse = jnp.mean((yp - yt) ** 2)
    reg = jnp.mean(jnp.abs(yp[:, 0, :]))
    return mse + lambda_y2 * reg


if __name__ == "__main__":
    key = jax.random.PRNGKey(0)
    keys = jax.random.split(key, 8)

    def check(yp, yt, **kw):
        out = jax.block_until_ready(y2_loss_regularisation(yp, yt, **kw))
        ref = _reference(yp, yt)
        assert jnp.allclose(out, ref, rtol=1e-4, atol=1e-4), (out, ref, kw)

    # Case 1: single block, single shard, no ragged tail.
    yp = jax.random.normal(keys[0], (2, 8, 128), dtype=jnp.float32)
    yt = jax.random.normal(keys[1], (2, 8, 128), dtype=jnp.float32)
    check(yp, yt)

    # Case 2: ragged tail + forced 2-way shard axis (exercises the clamped,
    # fully out-of-range block and the in-kernel row mask).
    yp = jax.random.normal(keys[2], (5, 8, 128), dtype=jnp.float32)
    yt = jax.random.normal(keys[3], (5, 8, 128), dtype=jnp.float32)
    check(yp, yt, block_batch=2, num_shards=2)

    # Case 3: multiple blocks, folded (8, C) reg accumulator, masked tail.
    yp = jax.random.normal(keys[4], (37, 8, 128), dtype=jnp.float32)
    yt = jax.random.normal(keys[5], (37, 8, 128), dtype=jnp.float32)
    check(yp, yt, block_batch=16)

    # Case 4: default tiling path with an in-kernel chunk loop (n_chunks > 1)
    # and a masked partial last block.
    yp = jax.random.normal(keys[6], (300, 8, 128), dtype=jnp.float32)
    yt = jax.random.normal(keys[7], (300, 8, 128), dtype=jnp.float32)
    check(yp, yt)

    print("KERNEL_OK")
</pallas_src>

<mosaic_0001>
module attributes {stable_mosaic.version = 11 : i64} {
  func.func @_y2_loss_kernel(%arg0: i32, %arg1: i32, %arg2: memref<2x8x128xf32, #tpu.memory_space<vmem>>, %arg3: memref<2x8x128xf32, #tpu.memory_space<vmem>>, %arg4: memref<1x2xf32, #tpu.memory_space<smem>>, %arg5: memref<8x128xf32, #tpu.memory_space<vmem>>, %arg6: memref<2x128xf32, #tpu.memory_space<vmem>>) attributes {dimension_semantics = [#tpu.dimension_semantics<parallel>, #tpu.dimension_semantics<arbitrary>], iteration_bounds = array<i64: 1, 1>, scalar_prefetch = 0 : i64, scratch_operands = 2 : i64, tpu.core_type = #tpu.core_type<tc>, window_params = [{transform_indices = @transform_0, window_bounds = array<i64: 2, 8, 128>}, {transform_indices = @transform_1, window_bounds = array<i64: 2, 8, 128>}, {transform_indices = @transform_2, window_bounds = array<i64: 1, 2>}]} {
    %c0_i32 = arith.constant 0 : i32
    %0 = arith.cmpi eq, %arg1, %c0_i32 : i32
    %1 = arith.extui %0 : i1 to i32
    %c0_i32_0 = arith.constant 0 : i32
    %2 = arith.cmpi ne, %1, %c0_i32_0 : i32
    scf.if %2 {
      %cst_24 = arith.constant 0.000000e+00 : f32
      %46 = vector.broadcast %cst_24 : f32 to vector<8x128xf32>
      %c0_25 = arith.constant 0 : index
      %c0_26 = arith.constant 0 : index
      %47 = vector.load %arg5[%c0_25, %c0_26] : memref<8x128xf32, #tpu.memory_space<vmem>>, vector<8x128xf32>
      tpu.vector_store %arg5[%c0_25, %c0_26], %46 {strides = array<i32>} : memref<8x128xf32, #tpu.memory_space<vmem>>, vector<8x128xf32>,
      %cst_27 = arith.constant 0.000000e+00 : f32
      %48 = vector.broadcast %cst_27 : f32 to vector<2x128xf32>
      %c0_28 = arith.constant 0 : index
      %c0_29 = arith.constant 0 : index
      %49 = vector.load %arg6[%c0_28, %c0_29] : memref<2x128xf32, #tpu.memory_space<vmem>>, vector<2x128xf32>
      tpu.vector_store %arg6[%c0_28, %c0_29], %48 {strides = array<i32>} : memref<2x128xf32, #tpu.memory_space<vmem>>, vector<2x128xf32>,
    } else {
    }
    %c1_i32 = arith.constant 1 : i32
    %3 = arith.muli %arg0, %c1_i32 : i32
    %4 = arith.addi %3, %arg1 : i32
    %c2_i32 = arith.constant 2 : i32
    %5 = arith.muli %4, %c2_i32 : i32
    %c0_i32_1 = arith.constant 0 : i32
    %c1_i32_2 = arith.constant 1 : i32
    %6 = arith.muli %c0_i32_1, %c1_i32_2 : i32
    %c0_i32_3 = arith.constant 0 : i32
    %7 = arith.addi %c0_i32_3, %6 : i32
    %c2_i32_4 = arith.constant 2 : i32
    %8 = arith.muli %7, %c2_i32_4 : i32
    %9 = tpu.assume_multiple %8, 2 : i32
    %10 = tpu.iota {dimensions = array<i32: 0>} : vector<2x1xi32>
    %11 = vector.broadcast %5 : i32 to vector<2x1xi32>
    %12 = arith.addi %10, %11 : vector<2x1xi32>
    %13 = vector.broadcast %9 : i32 to vector<2x1xi32>
    %14 = arith.addi %12, %13 : vector<2x1xi32>
    %c2_i32_5 = arith.constant 2 : i32
    %15 = vector.broadcast %c2_i32_5 : i32 to vector<2x1xi32>
    %16 = arith.cmpi slt, %14, %15 : vector<2x1xi32>
    %17 = vector.shape_cast %16 : vector<2x1xi1> to vector<2x1x1xi1>
    %18 = arith.index_cast %9 : i32 to index
    %c0 = arith.constant 0 : index
    %c0_6 = arith.constant 0 : index
    %19 = vector.load %arg2[%18, %c0, %c0_6] : memref<2x8x128xf32, #tpu.memory_space<vmem>>, vector<2x8x128xf32>
    %20 = arith.index_cast %9 : i32 to index
    %c0_7 = arith.constant 0 : index
    %c0_8 = arith.constant 0 : index
    %21 = vector.load %arg3[%20, %c0_7, %c0_8] : memref<2x8x128xf32, #tpu.memory_space<vmem>>, vector<2x8x128xf32>
    %22 = arith.subf %19, %21 : vector<2x8x128xf32>
    %cst = arith.constant 0.000000e+00 : f32
    %23 = vector.shape_cast %17 : vector<2x1x1xi1> to vector<2x1x1xi1>
    %24 = vector.broadcast %23 : vector<2x1x1xi1> to vector<2x8x128xi1>
    %25 = vector.broadcast %cst : f32 to vector<2x8x128xf32>
    %26 = arith.select %24, %22, %25 : vector<2x8x128xi1>, vector<2x8x128xf32>
    %c0_9 = arith.constant 0 : index
    %c0_10 = arith.constant 0 : index
    %27 = vector.load %arg5[%c0_9, %c0_10] : memref<8x128xf32, #tpu.memory_space<vmem>>, vector<8x128xf32>
    %28 = arith.mulf %26, %26 : vector<2x8x128xf32>
    %cst_11 = arith.constant dense<0.000000e+00> : vector<8x128xf32>
    %29 = vector.multi_reduction <add>, %28, %cst_11 [0] : vector<2x8x128xf32> to vector<8x128xf32>
    %30 = arith.addf %27, %29 : vector<8x128xf32>
    %c0_12 = arith.constant 0 : index
    %c0_13 = arith.constant 0 : index
    %31 = vector.load %arg5[%c0_12, %c0_13] : memref<8x128xf32, #tpu.memory_space<vmem>>, vector<8x128xf32>
    tpu.vector_store %arg5[%c0_12, %c0_13], %30 {strides = array<i32>} : memref<8x128xf32, #tpu.memory_space<vmem>>, vector<8x128xf32>,
    %32 = arith.index_cast %9 : i32 to index
    %c0_14 = arith.constant 0 : index
    %c0_15 = arith.constant 0 : index
    %33 = vector.load %arg2[%32, %c0_14, %c0_15] : memref<2x8x128xf32, #tpu.memory_space<vmem>>, vector<2x1x128xf32>
    %34 = vector.shape_cast %33 : vector<2x1x128xf32> to vector<2x128xf32>
    %35 = math.absf %34 : vector<2x128xf32>
    %cst_16 = arith.constant 0.000000e+00 : f32
    %36 = vector.shape_cast %16 : vector<2x1xi1> to vector<2x1xi1>
    %37 = vector.broadcast %36 : vector<2x1xi1> to vector<2x128xi1>
    %38 = vector.broadcast %cst_16 : f32 to vector<2x128xf32>
    %39 = arith.select %37, %35, %38 : vector<2x128xi1>, vector<2x128xf32>
    %c0_17 = arith.constant 0 : index
    %c0_18 = arith.constant 0 : index
    %40 = vector.load %arg6[%c0_17, %c0_18] : memref<2x128xf32, #tpu.memory_space<vmem>>, vector<2x128xf32>
    %41 = arith.addf %40, %39 : vector<2x128xf32>
    %c0_19 = arith.constant 0 : index
    %c0_20 = arith.constant 0 : index
    %42 = vector.load %arg6[%c0_19, %c0_20] : memref<2x128xf32, #tpu.memory_space<vmem>>, vector<2x128xf32>
    tpu.vector_store %arg6[%c0_19, %c0_20], %41 {strides = array<i32>} : memref<2x128xf32, #tpu.memory_space<vmem>>, vector<2x128xf32>,
    %c1_i32_21 = arith.constant 1 : i32
    %c0_i32_22 = arith.constant 0 : i32
    %43 = arith.cmpi eq, %arg1, %c0_i32_22 : i32
    %44 = arith.extui %43 : i1 to i32
    %c0_i32_23 = arith.constant 0 : i32
    %45 = arith.cmpi ne, %44, %c0_i32_23 : i32
    scf.if %45 {
      %c0_24 = arith.constant 0 : index
      %c0_25 = arith.constant 0 : index
      %46 = vector.load %arg5[%c0_24, %c0_25] : memref<8x128xf32, #tpu.memory_space<vmem>>, vector<8x128xf32>
      %47 = vector.shape_cast %46 : vector<8x128xf32> to vector<1x8x128xf32>
      %cst_26 = arith.constant dense<0.000000e+00> : vector<1xf32>
      %48 = vector.multi_reduction <add>, %47, %cst_26 [1, 2] : vector<1x8x128xf32> to vector<1xf32>
      %49 = vector.shape_cast %48 : vector<1xf32> to vector<1x1x1xf32>
      %50 = vector.extract %49[0, 0, 0] : f32 from vector<1x1x1xf32>
      %c0_27 = arith.constant 0 : index
      %c0_28 = arith.constant 0 : index
      %51 = memref.load %arg4[%c0_27, %c0_28] : memref<1x2xf32, #tpu.memory_space<smem>>
      memref.store %50, %arg4[%c0_27, %c0_28] : memref<1x2xf32, #tpu.memory_space<smem>>
      %c0_29 = arith.constant 0 : index
      %c0_30 = arith.constant 0 : index
      %52 = vector.load %arg6[%c0_29, %c0_30] : memref<2x128xf32, #tpu.memory_space<vmem>>, vector<2x128xf32>
      %53 = vector.shape_cast %52 : vector<2x128xf32> to vector<1x2x128xf32>
      %cst_31 = arith.constant dense<0.000000e+00> : vector<1xf32>
      %54 = vector.multi_reduction <add>, %53, %cst_31 [1, 2] : vector<1x2x128xf32> to vector<1xf32>
      %55 = vector.shape_cast %54 : vector<1xf32> to vector<1x1x1xf32>
      %56 = vector.extract %55[0, 0, 0] : f32 from vector<1x1x1xf32>
      %c0_32 = arith.constant 0 : index
      %c1 = arith.constant 1 : index
      %57 = memref.load %arg4[%c0_32, %c1] : memref<1x2xf32, #tpu.memory_space<smem>>
      memref.store %56, %arg4[%c0_32, %c1] : memref<1x2xf32, #tpu.memory_space<smem>>
    } else {
    }
    return
  }
  func.func @transform_0(%arg0: i32, %arg1: i32) -> (i32, i32, i32) {
    %c1_i32 = arith.constant 1 : i32
    %0 = arith.muli %arg0, %c1_i32 : i32
    %1 = arith.addi %0, %arg1 : i32
    %c0_i32 = arith.constant 0 : i32
    %2 = arith.minsi %1, %c0_i32 : i32
    %c0_i32_0 = arith.constant 0 : i32
    %c0_i32_1 = arith.constant 0 : i32
    %c0_i32_2 = arith.constant 0 : i32
    return %2, %c0_i32_0, %c0_i32_1 : i32, i32, i32
  }
  func.func @transform_1(%arg0: i32, %arg1: i32) -> (i32, i32, i32) {
    %c1_i32 = arith.constant 1 : i32
    %0 = arith.muli %arg0, %c1_i32 : i32
    %1 = arith.addi %0, %arg1 : i32
    %c0_i32 = arith.constant 0 : i32
    %2 = arith.minsi %1, %c0_i32 : i32
    %c0_i32_0 = arith.constant 0 : i32
    %c0_i32_1 = arith.constant 0 : i32
    %c0_i32_2 = arith.constant 0 : i32
    return %2, %c0_i32_0, %c0_i32_1 : i32, i32, i32
  }
  func.func @transform_2(%arg0: i32, %arg1: i32) -> (i32, i32) {
    %c0_i32 = arith.constant 0 : i32
    %c0_i32_0 = arith.constant 0 : i32
    return %arg0, %c0_i32 : i32, i32
  }
}

</mosaic_0001>

<bundles_post_ra>
// kernel: tpu_custom_call.1
= control target key start
LH: loop header
LB: loop body
LE: loop exit
PB: predicated region body
PF: predicated region fallthrough
CT: control target
= control target key end

     0   :  { %7 = vsyncpa [#allocation5], 0  ;;  %s280_s0 = inlined_call_operand.hbm [shape: f32[2,8,128], index: 0, kind: input, shape index: {}]   ;;  %s281_s1 = inlined_call_operand.hbm [shape: f32[2,8,128], index: 1, kind: input, shape index: {}]   ;;  %s282_s2 = inlined_call_operand.hbm [shape: f32[1,2], index: 2, kind: output, shape index: {}]  }
   0x1   :  { %8 = vsyncpa [#allocation8], 0 }
   0x2   :  { %9 = vsyncpa [#allocation6], 0  ;;  %s20_s11 = sshll.u32 %s280_s0, 4  ;;  %s247_s12 = smov [#allocation4]   ;;  %s21_s11 = int_to_ptr.hbm [resolvable:$true] %s20_s11 }
   0x3   :  { %s22_s13 = sshll.u32 %s247_s12, 4  ;;  %s39_s16 = sshll.u32 %s281_s1, 4  ;;  %s23_s13 = int_to_ptr.vmem [resolvable:$true] %s22_s13  ;;  %s40_s16 = int_to_ptr.hbm [resolvable:$true] %s39_s16 }
   0x4   :  { %s248_s17 = smov 128   ;;  %s249_s18 = smov 8  }
   0x5   :  { %28 = dma.hbm_to_vmem [thread:$0]  %s21_s11, 256, %s23_s13, [#allocation5], %s248_s17, %s248_s17, %s249_s18  }
   0x6   :  { %s250_s19 = smov [#allocation7]  }
   0x7   :  { %s41_s20 = sshll.u32 %s250_s19, 4  ;;  %s42_s20 = int_to_ptr.vmem [resolvable:$true] %s41_s20 }
   0x8   :  { %47 = dma.hbm_to_vmem [thread:$0]  %s40_s16, 256, %s42_s20, [#allocation8], %s248_s17, %s248_s17, %s249_s18  }
   0x9   :  { %241 = dma.done.wait [#allocation5], 256  }
   0xa   :  { %242 = vsyncadd [#allocation5], 4294967040 }
   0xb   :  { %243 = dma.done.wait [#allocation8], 256  }
   0xc   :  { %244 = vsyncadd [#allocation8], 4294967040  ;;  %v72_v0 = vlaneseq  ;;  %v251_v1 = vmov 0.0   ;;  %v252_v3 = vmov 0   ;;  %v86_v7 = vld [vmem:[#allocation4] sm:$0xff]  ;;  %v87_v8 = vld [vmem:[#allocation4 + $0x8] sm:$0xff] }
   0xd   :  { %69 = vst [vmem:[#allocation3] sm:$0x3] %v251_v1  ;;  %v89_v9 = vld [vmem:[#allocation7] sm:$0xff]  ;;  %v90_v10 = vld [vmem:[#allocation7 + $0x8] sm:$0xff]  ;;  %v105_v12 = vld [vmem:[#allocation4] sm:$0x1] }
   0xe   :  { %v73_v2 = vshrl.u32 %v72_v0, 7  ;;  %v91_v11 = vsub.f32 %v86_v7, %v89_v9  ;;  %v92_v13 = vsub.f32 %v87_v8, %v90_v10  ;;  %v106_v14 = vld [vmem:[#allocation4 + $0x8] sm:$0x1]  ;;  %v107_v16 = vand.u32 2147483647, %v105_v12  ;;  %s154_s22 = sshll.u32 %s282_s2, 4  ;;  %s155_s22 = int_to_ptr.hbm [resolvable:$true] %s154_s22 }
   0xf   :  { %v108_v17 = vand.u32 2147483647, %v106_v14  ;;  %vm113_vm3 = vcmask 1041409   ;;  %vm136_vm4 = vcmask 1041408   ;;  %s253_s24 = smov [#allocation9]  }
  0x10   :  { %vm78_vm0 = vcmp.lt.s32.totalorder %v73_v2, 2 }
  0x11   :  { %v79_v4 = vsel %vm78_vm0, 1, %v252_v3  ;;  %v112_v21 = vrot.slane %v108_v17, 7 }
  0x12   :  { %v80_v5 = vperm.slane %v79_v4, 0  ;;  %v81_v6 = vperm.slane %v79_v4, 1 }
  0x13   :  { %v114_v24 = vsel %vm113_vm3, %v112_v21, %v107_v16 }
  0x14   :  { %vm82_vm1 = vcmp.ne.s32.totalorder %v80_v5, 0  ;;  %vm83_vm2 = vcmp.ne.s32.totalorder %v81_v6, 0  ;;  %v117_v22 = vld [vmem:[#allocation3] sm:$0x3]  ;;  %v116_v25 = vsel %vm78_vm0, %v114_v24, 0.0 }
  0x15   :  { %v97_v15 = vsel %vm82_vm1, %v91_v11, 0.0  ;;  %v98_v18 = vsel %vm83_vm2, %v92_v13, 0.0  ;;  %v118_v26 = vadd.f32 %v117_v22, %v116_v25 }
  0x16   :  { %v100_v19 = vmul.f32 %v97_v15, %v97_v15  ;;  %v101_v20 = vmul.f32 %v98_v18, %v98_v18 }
  0x17   :  { %119 = vst [vmem:[#allocation3] sm:$0x3] %v118_v26 }
  0x18   :  { %v102_v23 = vadd.f32 %v101_v20, %v100_v19 }
  0x1a   :  { %124 = vadd.xlane.f32.xlu0 %v102_v23 }
  0x1e   :  { %v135_v27 = vld [vmem:[#allocation3] sm:$0x3] }
  0x1f   :  { %v137_v28 = vsel %vm136_vm4, %v135_v27, 0.0 }
  0x22   :  { %138 = vadd.xlane.f32.xlu0 %v137_v28 }
  0x8d   :  { %v125_v29 = vpop.xlane.xlu0 %124 }
  0x8e   :  { %v126_v30 = vrot.slane %v125_v29, 4 }
  0x90   :  { %v127_v31 = vadd.f32 %v126_v30, %v125_v29 }
  0x92   :  { %v128_v32 = vrot.slane %v127_v31, 2 }
  0x94   :  { %v129_v33 = vadd.f32 %v128_v32, %v127_v31 }
  0x95   :  { %v139_v35 = vpop.xlane.xlu0 %138 }
  0x96   :  { %v130_v34 = vrot.slane %v129_v33, 1  ;;  %v140_v37 = vrot.slane %v139_v35, 4 }
  0x98   :  { %v131_v36 = vadd.f32 %v130_v34, %v129_v33  ;;  %v141_v38 = vadd.f32 %v140_v37, %v139_v35 }
  0x9a   :  { %170 = vpush %v131_v36  ;;  %v142_v39 = vrot.slane %v141_v38, 2 }
  0x9c   :  { %v143_v40 = vadd.f32 %v142_v39, %v141_v38 }
  0x9e   :  { %v144_v41 = vrot.slane %v143_v40, 1 }
  0xa0   :  { %v145_v42 = vadd.f32 %v144_v41, %v143_v40 }
  0xa2   :  { %172 = vpush %v145_v42 }
  0xcb   :  { %s171_s0 = spop %170 }
  0xcc   :  { %134 = sst [smem:[#allocation9]] %s171_s0 }
  0xd3   :  { %s173_s23 = spop %172 }
  0xd4   :  { %148 = sst [smem:[#allocation9 + $0x1]] %s173_s23 }
  0xd5   :  { %157 = dma.smem_to_hbm %s253_s24, 16, %s155_s22, [#allocation6]  }
  0xd6   :  { %245 = dma.done.wait [#allocation6], 16  }
  0xd7   :  { %246 = vsyncadd [#allocation6], 4294967280 }
  0xd8   :  { %162 = sfence }
  0xd9   :  { %163 = vsyncpa [#allocation5], 1 }
  0xda   :  { %164 = vsyncpa [#allocation8], 1 }
  0xdb   :  { %165 = vsyncpa [#allocation6], 1 }

</bundles_post_ra>
